<compile_context>
chip_gen: v5e
topology: v5e:2x2
jax: 0.10.0
libtpu: 0.0.40
codegen_flags: <defaults>
</compile_context>

<pallas_src>
import functools

import jax
import jax.numpy as jnp
from jax.experimental import pallas as pl
from jax.experimental.pallas import tpu as pltpu


def _round_up(x, m):
    return (x + m - 1) // m * m


# --------------------------------------------------------------------------- #
# Kernel
# --------------------------------------------------------------------------- #
def _tcg2_kernel(x_ref, w_ref, b_ref, out_ref, *, o_pad):
    """One fused matmul; accumulator columns are [gate | target | source1+2]."""
    f32 = jnp.float32
    acc = jnp.dot(x_ref[...], w_ref[...], preferred_element_type=f32)
    acc = acc + b_ref[...]                       # single fused bias add (f32)

    z1 = jax.nn.sigmoid(acc[:, :o_pad])          # EUP, f32
    target = acc[:, o_pad:2 * o_pad]
    source = acc[:, 2 * o_pad:]                  # source1 + source2 (folded)

    out_ref[...] = jnp.tanh(z1 * target + source).astype(out_ref.dtype)


# --------------------------------------------------------------------------- #
# One-time parameter preparation (hoisted out of the per-call path)
# --------------------------------------------------------------------------- #
def prepare_params(params, *, compute_dtype=jnp.bfloat16):
    """Fuse the four projections into one (K, 3*Op) weight + one (1, 3*Op) bias.

    Weights in `params` are stored transposed, i.e. (in_features, out_features),
    so y = x @ W + b.  Fused row order: [prev_emb|dec_state , attn1 , attn2];
    fused column groups: [gate | target | source1+source2], each Op wide.
    """
    f32 = jnp.float32
    Wg = params["W_gate"].astype(f32)            # (E+D+A1, O)
    Wt = params["W_t"].astype(f32)               # (E+D,     O)
    Ws1 = params["W_s1"].astype(f32)             # (A1,      O)
    Ws2 = params["W_s2"].astype(f32)             # (A2,      O)

    ED = Wt.shape[0]
    A1 = Ws1.shape[0]
    A2 = Ws2.shape[0]
    O = params["b_gate"].shape[-1]
    Op = _round_up(O, 128)                       # lane-dense output width

    def pad_cols(w):
        return jnp.pad(w, ((0, 0), (0, Op - O))) if Op != O else w

    zeros = lambda r: jnp.zeros((r, O), f32)
    gate_col = jnp.concatenate([Wg[:ED], Wg[ED:], zeros(A2)], axis=0)   # (K, O)
    target_col = jnp.concatenate([Wt, zeros(A1 + A2)], axis=0)
    source_col = jnp.concatenate([zeros(ED), Ws1, Ws2], axis=0)

    W_fused = jnp.concatenate(
        [pad_cols(gate_col), pad_cols(target_col), pad_cols(source_col)], axis=1
    ).astype(compute_dtype)                       # (K, 3*Op)

    def pad_bias(b):
        b = b.astype(f32).reshape(1, O)
        return jnp.pad(b, ((0, 0), (0, Op - O))) if Op != O else b

    b_fused = jnp.concatenate(
        [pad_bias(params["b_gate"]),
         pad_bias(params["b_t"]),
         pad_bias(params["b_s1"]) + pad_bias(params["b_s2"])], axis=1)   # (1, 3*Op) f32

    return {"W_fused": W_fused, "b_fused": b_fused,
            "O": O, "Op": Op, "ED": ED, "A1": A1, "A2": A2}


# --------------------------------------------------------------------------- #
# Forward wrapper
# --------------------------------------------------------------------------- #
def target_context_gate2(prev_emb, dec_state, attn1_state, attn2_state,
                         prepared, *, block_rows=1024, out_dtype=None):
    """Pallas TPU implementation of TargetContextGate2.forward."""
    compute_dtype = prepared["W_fused"].dtype
    O, Op = prepared["O"], prepared["Op"]
    B = prev_emb.shape[0]
    if out_dtype is None:
        out_dtype = prev_emb.dtype

    # Single concatenated + cast activation (one producer-side copy, one wide
    # kernel input instead of four narrow lane-wasting ones).
    x = jnp.concatenate(
        [prev_emb, dec_state, attn1_state, attn2_state], axis=1
    ).astype(compute_dtype)
    K = x.shape[1]

    # ---------------- batch tiling -------------------------------------------
    B8 = _round_up(B, 8)
    TB = min(_round_up(block_rows, 8), B8)
    num_steps = pl.cdiv(B, TB)
    if num_steps == 1 and B8 >= 512:
        num_steps = 2                 # v7x: keep both TensorCores busy
    if num_steps > 1:
        TB = _round_up(pl.cdiv(B, num_steps), 8)   # balanced tiles
    grid = (pl.cdiv(B, TB),)

    # ---------------- VMEM budget (tiles + resident weights + f32 temps) ------
    cs = jnp.dtype(compute_dtype).itemsize
    os_ = jnp.dtype(out_dtype).itemsize
    K_lane = _round_up(K, 128)
    vmem_bytes = (
        2 * TB * K_lane * cs          # double-buffered activation tile
        + 2 * TB * Op * os_           # double-buffered output tile
        + 2 * K_lane * 3 * Op * cs    # weights (conservatively x2)
        + 2 * 3 * Op * 4              # fused bias
        + 4 * TB * 3 * Op * 4         # f32 accumulator + elementwise temps
    )
    vmem_limit = int(min(56 * 1024 * 1024, max(2 * vmem_bytes, 16 * 1024 * 1024)))

    out = pl.pallas_call(
        functools.partial(_tcg2_kernel, o_pad=Op),
        out_shape=jax.ShapeDtypeStruct((B, Op), out_dtype),
        grid=grid,
        in_specs=[
            pl.BlockSpec((TB, K), lambda i: (i, 0)),
            # Constant index_map -> weights/bias stay VMEM-resident across steps.
            pl.BlockSpec((K, 3 * Op), lambda i: (0, 0)),
            pl.BlockSpec((1, 3 * Op), lambda i: (0, 0)),
        ],
        out_specs=pl.BlockSpec((TB, Op), lambda i: (i, 0)),
        compiler_params=pltpu.CompilerParams(
            dimension_semantics=("parallel",),
            vmem_limit_bytes=vmem_limit,
        ),
    )(x, prepared["W_fused"], prepared["b_fused"])

    return out[:, :O] if Op != O else out


# --------------------------------------------------------------------------- #
# Pure-JAX reference (mirrors the PyTorch module)
# --------------------------------------------------------------------------- #
def _reference(prev_emb, dec_state, attn1_state, attn2_state, params):
    x1 = jnp.concatenate([prev_emb, dec_state, attn1_state], axis=1)
    z1 = jax.nn.sigmoid(x1 @ params["W_gate"] + params["b_gate"])
    s1 = attn1_state @ params["W_s1"] + params["b_s1"]
    s2 = attn2_state @ params["W_s2"] + params["b_s2"]
    t = jnp.concatenate([prev_emb, dec_state], axis=1) @ params["W_t"] + params["b_t"]
    return jnp.tanh(z1 * t + s1 + s2)


if __name__ == "__main__":
    # Small shapes consistent with the module's forward.
    B = 8            # batch
    E = 16           # embeddings_size
    D = 32           # decoder_size
    A1 = 24          # attention1_size
    A2 = 24          # attention2_size
    O = 32           # output_size

    key = jax.random.PRNGKey(0)
    keys = jax.random.split(key, 12)

    prev_emb = jax.random.normal(keys[0], (B, E), jnp.float32)
    dec_state = jax.random.normal(keys[1], (B, D), jnp.float32)
    attn1_state = jax.random.normal(keys[2], (B, A1), jnp.float32)
    attn2_state = jax.random.normal(keys[3], (B, A2), jnp.float32)

    # Deterministic synthetic parameters (stored as (in, out)).
    params = {
        "W_gate": jax.random.normal(keys[4], (E + D + A1, O), jnp.float32) * 0.1,
        "b_gate": jax.random.normal(keys[5], (O,), jnp.float32) * 0.1,
        "W_s1":   jax.random.normal(keys[6], (A1, O), jnp.float32) * 0.1,
        "b_s1":   jax.random.normal(keys[7], (O,), jnp.float32) * 0.1,
        "W_s2":   jax.random.normal(keys[8], (A2, O), jnp.float32) * 0.1,
        "b_s2":   jax.random.normal(keys[9], (O,), jnp.float32) * 0.1,
        "W_t":    jax.random.normal(keys[10], (E + D, O), jnp.float32) * 0.1,
        "b_t":    jax.random.normal(keys[11], (O,), jnp.float32) * 0.1,
    }

    ref = _reference(prev_emb, dec_state, attn1_state, attn2_state, params)

    # f32 compute path (tight tolerance against the reference).
    prep_f32 = prepare_params(params, compute_dtype=jnp.float32)
    out = target_context_gate2(prev_emb, dec_state, attn1_state, attn2_state, prep_f32)
    out = jax.block_until_ready(out)
    assert out.shape == (B, O)
    assert jnp.allclose(out, ref, atol=1e-5, rtol=1e-5), "f32 mismatch vs reference"

    # bf16 MXU-input path (bandwidth-optimized default; f32 accum + elementwise).
    prep_bf16 = prepare_params(params)                      # compute_dtype=bf16
    out_bf16 = target_context_gate2(prev_emb, dec_state, attn1_state, attn2_state,
                                    prep_bf16)
    out_bf16 = jax.block_until_ready(out_bf16)
    assert out_bf16.shape == (B, O)
    assert jnp.allclose(out_bf16, ref, atol=5e-2, rtol=5e-2), "bf16 mismatch vs reference"

    print("KERNEL_OK")
</pallas_src>

<mosaic_0001>
module attributes {stable_mosaic.version = 11 : i64} {
  func.func @_tcg2_kernel(%arg0: i32, %arg1: memref<8x96xf32, #tpu.memory_space<vmem>>, %arg2: memref<96x384xf32, #tpu.memory_space<vmem>>, %arg3: memref<1x384xf32, #tpu.memory_space<vmem>>, %arg4: memref<8x128xf32, #tpu.memory_space<vmem>>) attributes {dimension_semantics = [#tpu.dimension_semantics<parallel>], iteration_bounds = array<i64: 1>, scalar_prefetch = 0 : i64, scratch_operands = 0 : i64, tpu.core_type = #tpu.core_type<tc>, window_params = [{transform_indices = @transform_0, window_bounds = array<i64: 8, 96>}, {pipeline_mode = #tpu.pipeline_mode<synchronous>, transform_indices = @transform_1, window_bounds = array<i64: 96, 384>}, {pipeline_mode = #tpu.pipeline_mode<synchronous>, transform_indices = @transform_2, window_bounds = array<i64: 1, 384>}, {transform_indices = @transform_3, window_bounds = array<i64: 8, 128>}]} {
    %c0 = arith.constant 0 : index
    %c0_0 = arith.constant 0 : index
    %0 = vector.load %arg1[%c0, %c0_0] : memref<8x96xf32, #tpu.memory_space<vmem>>, vector<8x96xf32>
    %c0_1 = arith.constant 0 : index
    %c0_2 = arith.constant 0 : index
    %1 = vector.load %arg2[%c0_1, %c0_2] : memref<96x384xf32, #tpu.memory_space<vmem>>, vector<96x384xf32>
    %cst = arith.constant dense<0.000000e+00> : vector<8x384xf32>
    %2 = tpu.matmul %0, %1, %cst {dimension_numbers = #tpu.dot_dimension_numbers<[1], [0], [0], [1], [0, 0, 1, 1], [], []>} : vector<8x96xf32>, vector<96x384xf32>, vector<8x384xf32> -> vector<8x384xf32>
    %c0_3 = arith.constant 0 : index
    %c0_4 = arith.constant 0 : index
    %3 = vector.load %arg3[%c0_3, %c0_4] : memref<1x384xf32, #tpu.memory_space<vmem>>, vector<1x384xf32>
    %4 = vector.broadcast %3 : vector<1x384xf32> to vector<8x384xf32>
    %5 = arith.addf %2, %4 : vector<8x384xf32>
    %6 = vector.extract_strided_slice %5 {offsets = [0, 0], sizes = [8, 128], strides = [1, 1]} : vector<8x384xf32> to vector<8x128xf32>
    %7 = arith.negf %6 : vector<8x128xf32>
    %8 = math.exp %7 : vector<8x128xf32>
    %cst_5 = arith.constant 1.000000e+00 : f32
    %9 = vector.broadcast %cst_5 : f32 to vector<8x128xf32>
    %10 = arith.addf %9, %8 : vector<8x128xf32>
    %11 = arith.divf %9, %10 : vector<8x128xf32>
    %12 = vector.extract_strided_slice %5 {offsets = [0, 128], sizes = [8, 128], strides = [1, 1]} : vector<8x384xf32> to vector<8x128xf32>
    %13 = vector.extract_strided_slice %5 {offsets = [0, 256], sizes = [8, 128], strides = [1, 1]} : vector<8x384xf32> to vector<8x128xf32>
    %14 = arith.mulf %11, %12 : vector<8x128xf32>
    %15 = arith.addf %14, %13 : vector<8x128xf32>
    %16 = math.tanh %15 : vector<8x128xf32>
    %c0_6 = arith.constant 0 : index
    %c0_7 = arith.constant 0 : index
    %17 = vector.load %arg4[%c0_6, %c0_7] : memref<8x128xf32, #tpu.memory_space<vmem>>, vector<8x128xf32>
    tpu.vector_store %arg4[%c0_6, %c0_7], %16 {strides = array<i32>} : memref<8x128xf32, #tpu.memory_space<vmem>>, vector<8x128xf32>,
    return
  }
  func.func @transform_0(%arg0: i32) -> (i32, i32) {
    %c0_i32 = arith.constant 0 : i32
    %c0_i32_0 = arith.constant 0 : i32
    return %arg0, %c0_i32 : i32, i32
  }
  func.func @transform_1(%arg0: i32) -> (i32, i32) {
    %c0_i32 = arith.constant 0 : i32
    %c0_i32_0 = arith.constant 0 : i32
    %c0_i32_1 = arith.constant 0 : i32
    return %c0_i32, %c0_i32_0 : i32, i32
  }
  func.func @transform_2(%arg0: i32) -> (i32, i32) {
    %c0_i32 = arith.constant 0 : i32
    %c0_i32_0 = arith.constant 0 : i32
    %c0_i32_1 = arith.constant 0 : i32
    return %c0_i32, %c0_i32_0 : i32, i32
  }
  func.func @transform_3(%arg0: i32) -> (i32, i32) {
    %c0_i32 = arith.constant 0 : i32
    %c0_i32_0 = arith.constant 0 : i32
    return %arg0, %c0_i32 : i32, i32
  }
}

</mosaic_0001>

<bundles_post_ra>
// kernel: tpu_custom_call.1
= control target key start
LH: loop header
LB: loop body
LE: loop exit
PB: predicated region body
PF: predicated region fallthrough
CT: control target
= control target key end

     0   :  { %8 = vsyncpa [#allocation3], 0  ;;  %s367_s0 = inlined_call_operand.hbm [shape: f32[8,96], index: 0, kind: input, shape index: {}]   ;;  %s368_s1 = inlined_call_operand.hbm [shape: f32[96,384], index: 1, kind: input, shape index: {}]   ;;  %s369_s2 = inlined_call_operand.hbm [shape: f32[1,384], index: 2, kind: input, shape index: {}]   ;;  %s370_s3 = inlined_call_operand.hbm [shape: f32[8,128], index: 3, kind: output, shape index: {}]  }
   0x1   :  { %9 = vsyncpa [#allocation6], 0  ;;  %s26_s14 = sshll.u32 %s368_s1, 4  ;;  %s27_s14 = int_to_ptr.hbm [resolvable:$true] %s26_s14 }
   0x2   :  { %10 = vsyncpa [#allocation4], 0  ;;  %s326_s15 = smov [#allocation5]   ;;  %s16_s19 = sshll.u32 %s367_s0, 4  ;;  %s17_s19 = int_to_ptr.hbm [resolvable:$true] %s16_s19 }
   0x3   :  { %s28_s16 = sshll.u32 %s326_s15, 4  ;;  %s327_s20 = smov 384   ;;  %s29_s16 = int_to_ptr.vmem [resolvable:$true] %s28_s16 }
   0x4   :  { %s328_s21 = smov 24   ;;  %s329_s22 = smov [#allocation2]  }
   0x5   :  { %34 = dma.hbm_to_vmem [thread:$0]  %s27_s14, 4608, %s29_s16, [#allocation6], %s327_s20, %s327_s20, %s328_s21  }
   0x6   :  { %s18_s23 = sshll.u32 %s329_s22, 4  ;;  %s40_s26 = sshll.u32 %s369_s2, 4  ;;  %s19_s23 = int_to_ptr.vmem [resolvable:$true] %s18_s23  ;;  %s41_s26 = int_to_ptr.hbm [resolvable:$true] %s40_s26 }
   0x7   :  { %21 = dma.hbm_to_vmem [thread:$0]  %s17_s19, 128, %s19_s23, [#allocation3]  }
   0x8   :  { %s330_s1 = smov [#allocation7]  }
   0x9   :  { %s42_s27 = sshll.u32 %s330_s1, 4  ;;  %s43_s27 = int_to_ptr.vmem [resolvable:$true] %s42_s27 }
   0xa   :  { %45 = dma.hbm_to_vmem [thread:$0]  %s41_s26, 48, %s43_s27, [#allocation6]  }
   0xb   :  { %320 = dma.done.wait [#allocation3], 128  }
   0xc   :  { %321 = vsyncadd [#allocation3], 4294967168 }
   0xd   :  { %322 = dma.done.wait [#allocation6], 4656  }
   0xe   :  { %323 = vsyncadd [#allocation6], 4294962640  ;;  %v92_v0 = vld [vmem:[#allocation5 + $0x108] sm:$0xff]  ;;  %v89_v1 = vld [vmem:[#allocation5 + $0xf0] sm:$0xff]  ;;  %vm103_vm0 = vcmask 785408   ;;  %s331_s0 = smov [#allocation8]  }
   0xf   :  { %111 = vmatpush.msra.mxu0 %v92_v0  ;;  %v86_v2 = vld [vmem:[#allocation5 + $0xd8] sm:$0xff]  ;;  %v83_v3 = vld [vmem:[#allocation5 + $0xc0] sm:$0xff]  ;;  %v93_v6 = vld [vmem:[#allocation5 + $0x110] sm:$0xff]  ;;  %s195_s2 = sshll.u32 %s331_s0, 4  ;;  %s197_s30 = sshll.u32 %s370_s3, 4  ;;  %s196_s2 = int_to_ptr.vmem [resolvable:$true] %s195_s2  ;;  %s198_s30 = int_to_ptr.hbm [resolvable:$true] %s197_s30 }
  0x10   :  { %v94_v4 = vld [vmem:[#allocation5 + $0x118] sm:$0xff]  ;;  %v91_v5 = vld [vmem:[#allocation5 + $0x100] sm:$0xff]  ;;  %v80_v8 = vld [vmem:[#allocation5 + $0xa8] sm:$0xff]  ;;  %131 = vmatpush.msra.mxu1 %v93_v6 }
  0x11   :  { %112 = vmatpush.msra.mxu0 %v89_v1  ;;  %151 = vmatpush.msra.mxu2 %v94_v4  ;;  %v90_v7 = vld [vmem:[#allocation5 + $0xf8] sm:$0xff]  ;;  %v88_v9 = vld [vmem:[#allocation5 + $0xe8] sm:$0xff]  ;;  %v87_v10 = vld [vmem:[#allocation5 + $0xe0] sm:$0xff] }
  0x12   :  { %v77_v11 = vld [vmem:[#allocation5 + $0x90] sm:$0xff]  ;;  %132 = vmatpush.msra.mxu1 %v90_v7  ;;  %v84_v13 = vld [vmem:[#allocation5 + $0xc8] sm:$0xff]  ;;  %v74_v14 = vld [vmem:[#allocation5 + $0x78] sm:$0xff] }
  0x13   :  { %113 = vmatpush.msra.mxu0 %v86_v2  ;;  %152 = vmatpush.msra.mxu2 %v91_v5  ;;  %v85_v12 = vld [vmem:[#allocation5 + $0xd0] sm:$0xff]  ;;  %v82_v15 = vld [vmem:[#allocation5 + $0xb8] sm:$0xff]  ;;  %v71_v17 = vld [vmem:[#allocation5 + $0x60] sm:$0xff] }
  0x14   :  { %133 = vmatpush.msra.mxu1 %v87_v10  ;;  %v81_v16 = vld [vmem:[#allocation5 + $0xb0] sm:$0xff]  ;;  %v79_v18 = vld [vmem:[#allocation5 + $0xa0] sm:$0xff]  ;;  %v78_v19 = vld [vmem:[#allocation5 + $0x98] sm:$0xff] }
  0x15   :  { %114 = vmatpush.msra.mxu0 %v83_v3  ;;  %153 = vmatpush.msra.mxu2 %v88_v9  ;;  %v68_v20 = vld [vmem:[#allocation5 + $0x48] sm:$0xff]  ;;  %v75_v22 = vld [vmem:[#allocation5 + $0x80] sm:$0xff]  ;;  %v65_v23 = vld [vmem:[#allocation5 + $0x30] sm:$0xff] }
  0x16   :  { %134 = vmatpush.msra.mxu1 %v84_v13  ;;  %v76_v21 = vld [vmem:[#allocation5 + $0x88] sm:$0xff]  ;;  %v73_v24 = vld [vmem:[#allocation5 + $0x70] sm:$0xff]  ;;  %v62_v26 = vld [vmem:[#allocation5 + $0x18] sm:$0xff] }
  0x17   :  { %115 = vmatpush.msra.mxu0 %v80_v8  ;;  %154 = vmatpush.msra.mxu2 %v85_v12  ;;  %v72_v25 = vld [vmem:[#allocation5 + $0x68] sm:$0xff]  ;;  %v70_v27 = vld [vmem:[#allocation5 + $0x58] sm:$0xff]  ;;  %v69_v28 = vld [vmem:[#allocation5 + $0x50] sm:$0xff] }
  0x18   :  { %135 = vmatpush.msra.mxu1 %v81_v16  ;;  %v59_v29 = vld [vmem:[#allocation5] sm:$0xff]  ;;  %v58_v31 = vld [vmem:[#allocation2] sm:$0xff]  ;;  %v64_v33 = vld [vmem:[#allocation5 + $0x28] sm:$0xff] }
  0x19   :  { %116 = vmatpush.msra.mxu0 %v77_v11  ;;  %155 = vmatpush.msra.mxu2 %v82_v15  ;;  %v67_v30 = vld [vmem:[#allocation5 + $0x40] sm:$0xff]  ;;  %v66_v32 = vld [vmem:[#allocation5 + $0x38] sm:$0xff]  ;;  %v61_v35 = vld [vmem:[#allocation5 + $0x10] sm:$0xff] }
  0x1a   :  { %136 = vmatpush.msra.mxu1 %v78_v19  ;;  %v63_v34 = vld [vmem:[#allocation5 + $0x20] sm:$0xff]  ;;  %v60_v36 = vld [vmem:[#allocation5 + $0x8] sm:$0xff] }
  0x1b   :  { %117 = vmatpush.msra.mxu0 %v74_v14  ;;  %156 = vmatpush.msra.mxu2 %v79_v18  ;;  %v95_v37 = vld [vmem:[#allocation7] sm:$0x7] }
  0x1c   :  { %137 = vmatpush.msra.mxu1 %v75_v22  ;;  %v97_v38 = vperm.slane %v95_v37, 0  ;;  %v98_v46 = vperm.slane %v95_v37, 1  ;;  %v99_v52 = vperm.slane %v95_v37, 2 }
  0x1d   :  { %118 = vmatpush.msra.mxu0 %v71_v17  ;;  %157 = vmatpush.msra.mxu2 %v76_v21 }
  0x1e   :  { %138 = vmatpush.msra.mxu1 %v72_v25 }
  0x1f   :  { %119 = vmatpush.msra.mxu0 %v68_v20  ;;  %158 = vmatpush.msra.mxu2 %v73_v24 }
  0x20   :  { %139 = vmatpush.msra.mxu1 %v69_v28 }
  0x21   :  { %120 = vmatpush.msra.mxu0 %v65_v23  ;;  %159 = vmatpush.msra.mxu2 %v70_v27 }
  0x22   :  { %140 = vmatpush.msra.mxu1 %v66_v32 }
  0x23   :  { %121 = vmatpush.msra.mxu0 %v62_v26  ;;  %160 = vmatpush.msra.mxu2 %v67_v30 }
  0x24   :  { %141 = vmatpush.msra.mxu1 %v63_v34 }
  0x25   :  { %122 = vmatpush.msra.mxu0 %v59_v29  ;;  %161 = vmatpush.msra.mxu2 %v64_v33 }
  0x26   :  { %208 = vmatmul.msk.f32.vlgmr.msra.gmra.mxu0 %vm103_vm0, %v58_v31  ;;  %142 = vmatpush.msra.mxu1 %v60_v36 }
  0x27   :  { %162 = vmatpush.msra.mxu2 %v61_v35  ;;  %209 = vmatmul.msk.f32.vlgmr.msra.gmra.mxu1 %vm103_vm0, %v58_v31 }
  0x28   :  { %210 = vmatmul.msk.f32.vlgmr.msra.gmra.mxu2 %vm103_vm0, %v58_v31 }
  0xa3   :  { %v124_v39 = vpop.f32.mrf.mxu0 }
  0xa4   :  { %v125_v40 = vadd.f32 %v124_v39, %v97_v38  ;;  %v144_v48 = vpop.f32.mrf.mxu1 }
  0xa5   :  { %v145_v54 = vadd.f32 %v144_v48, %v98_v46 }
  0xa6   :  { %v211_v41 = vmul.f32 -1.442695, %v125_v40 }
  0xa8   :  { %218 = vpow2.f32 %v211_v41 }
  0xab   :  { %v164_v53 = vpop.f32.mrf.mxu2 }
  0xac   :  { %v165_v58 = vadd.f32 %v164_v53, %v99_v52 }
  0xae   :  { %v219_v42 = vpop.eup %218 }
  0xaf   :  { %v170_v43 = vadd.f32 1.0, %v219_v42 }
  0xb1   :  { %220 = vrcp.f32 %v170_v43  ;;  %v182_v49 = vand.u32 2147483648, %v170_v43  ;;  %v180_v51 = vand.u32 2147483647, %v170_v43  ;;  %vm176_vm2 = vweird.f32 %v170_v43 }
  0xb3   :  { %v183_v56 = vor.u32 1.1754944e-38, %v182_v49  ;;  %vm181_vm4 = vcmp.eq.f32.partialorder %v180_v51, 8.507059e+37 }
  0xb7   :  { %v221_v44 = vpop.eup %220 }
  0xb8   :  { %v172_v45 = vmul.f32 %v221_v44, %v170_v43  ;;  %vm177_vm1 = vweird.f32 %v221_v44 }
  0xb9   :  { %vm178_vm3 = vmor %vm176_vm2, %vm177_vm1 }
  0xba   :  { %v173_v47 = vsub.f32 1.0, %v172_v45 }
  0xbc   :  { %v174_v50 = vmul.f32 %v221_v44, %v173_v47 }
  0xbe   :  { %v175_v55 = vadd.f32 %v221_v44, %v174_v50 }
  0xc0   :  { %v179_v57 = vsel %vm178_vm3, %v221_v44, %v175_v55 }
  0xc1   :  { %v184_v59 = vsel %vm181_vm4, %v183_v56, %v179_v57 }
  0xc2   :  { %v186_v60 = vmul.f32 %v184_v59, %v145_v54 }
  0xc4   :  { %v187_v61 = vadd.f32 %v186_v60, %v165_v58 }
  0xc6   :  { %222 = vtanh.f32 %v187_v61 }
  0xcc   :  { %v223_v62 = vpop.eup %222 }
  0xcd   :  { %189 = vst [vmem:[#allocation8] sm:$0xff] %v223_v62 }
  0xce   :  { %200 = dma.vmem_to_hbm [thread:$0]  %s196_s2, 128, %s198_s30, [#allocation4]  }
  0xcf   :  { %324 = dma.done.wait [#allocation4], 128  }
  0xd0   :  { %325 = vsyncadd [#allocation4], 4294967168 }
  0xd1   :  { %205 = vsyncpa [#allocation3], 1 }
  0xd2   :  { %206 = vsyncpa [#allocation6], 1 }
  0xd3   :  { %207 = vsyncpa [#allocation4], 1 }

</bundles_post_ra>
